<compile_context>
chip_gen: v7x
topology: tpu7x:2x2x1
jax: 0.10.0
libtpu: 0.0.40
codegen_flags: <defaults>
</compile_context>

<pallas_src>
import functools

import jax
import jax.numpy as jnp
from jax import lax
from jax.experimental import pallas as pl
from jax.experimental.pallas import tpu as pltpu


_LANES = 128
# Stay comfortably under every generation's scoped-VMEM default
# (16 MiB on v5e, 32 MiB on v6e/v7x) without touching vmem_limit_bytes.
_VMEM_BUDGET_BYTES = 12 * 1024 * 1024


def _ar_gas_kernel(k, chunk_rows, ns_static, general,
                   params_ref, mu0_ref, s20_ref, mu_out_ref, sig_out_ref):
    """One grid step advances block_rows*128 independent AR_GAS recursions.

    params_ref (SMEM f32[8]): [alpha_mu, alpha_sigma, beta_mu, beta_sigma,
                               omega_mu, omega_sigma, nu, norm_strength]
    The recursion runs per row-chunk (chunk_rows x 128 = a few vregs) so mu/s2
    stay resident in registers across all k unrolled steps; each step stores
    straight into the lane-dense output blocks.
    """
    a_mu = params_ref[0]
    a_s = params_ref[1]
    b_mu = params_ref[2]
    b_s = params_ref[3]
    o_mu = params_ref[4]
    o_s = params_ref[5]
    nu = params_ref[6]
    # Loop-invariant scalar work, once per kernel invocation (not per step/chunk).
    neg_ns = -params_ref[7]
    wc = (nu + 1.0) / nu
    inv_nu = 1.0 / nu

    block_rows = mu0_ref.shape[0]
    n_chunks = block_rows // chunk_rows
    out_dtype = mu_out_ref.dtype

    def run_chunk(c, carry):
        if isinstance(c, int):                      # static single-chunk path
            off = c * chunk_rows
        else:
            off = pl.multiple_of(c * chunk_rows, chunk_rows)
        rows = pl.ds(off, chunk_rows)
        mu = mu0_ref[rows, :]
        s2 = s20_ref[rows, :]
        for i in range(k):
            s2c = jnp.maximum(s2, 1e-6)             # numeric floor (matches reference)
            if general:
                # Full Student-t GAS update.  The module feeds y = mu_prev, so
                # eps == 0 and the score terms are inert; kept for fidelity.
                y = mu
                eps = y - mu
                w = wc * s2c / (s2c + eps * eps * inv_nu)
                if ns_static is None:
                    scale = jnp.exp(neg_ns * jnp.log(s2c))
                elif ns_static == 0.5:
                    scale = lax.rsqrt(s2c)
                elif ns_static == 0.0:
                    scale = jnp.ones_like(s2c)
                elif ns_static == 1.0:
                    scale = 1.0 / s2c
                else:
                    scale = jnp.exp((-ns_static) * jnp.log(s2c))
                s_mu = w * eps * scale
                s_s2 = (w * eps * eps - s2c) * scale
                mu = o_mu + b_mu * mu + a_mu * s_mu
            else:
                # eps == 0 specialization: s_mu vanishes; s_s2 = -s2c * s2c^(-ns),
                # fused per static norm_strength (rsqrt/sqrt/identity fast paths).
                if ns_static is None:
                    s_s2 = -s2c * jnp.exp(neg_ns * jnp.log(s2c))
                elif ns_static == 0.5:
                    s_s2 = -jnp.sqrt(s2c)
                elif ns_static == 0.0:
                    s_s2 = -s2c
                elif ns_static == 1.0:
                    s_s2 = jnp.full_like(s2c, -1.0)
                else:
                    s_s2 = -jnp.exp((1.0 - ns_static) * jnp.log(s2c))
                mu = o_mu + b_mu * mu
            s2 = jnp.maximum(o_s + b_s * s2c + a_s * s_s2, 1e-6)
            # Direct per-step stores into the lane-dense output blocks.
            mu_out_ref[i, rows, :] = mu.astype(out_dtype)
            sig_out_ref[i, rows, :] = jnp.sqrt(s2).astype(out_dtype)
        return carry

    if n_chunks == 1:
        run_chunk(0, 0)
    else:
        lax.fori_loop(0, n_chunks, run_chunk, 0)


def _pick_block_rows(rows, k):
    # Double-buffered VMEM per grid step:
    #   inputs : 2 arrays * 2 bufs * block_rows * 128 * 4 B
    #   outputs: 2 arrays * 2 bufs * k * block_rows * 128 * 4 B
    bytes_per_row = 2 * 2 * _LANES * 4 * (1 + k)
    max_rows = _VMEM_BUDGET_BYTES // bytes_per_row
    if max_rows >= 32:
        max_rows = max_rows // 32 * 32      # chunk_rows = 32 divides cleanly
    else:
        max_rows = max(8, max_rows // 8 * 8)  # (only reachable for extreme k)
    # v7x has 2 TensorCores: keep >= 2 grid steps when the batch allows it so the
    # "parallel" axis actually shards; near-zero impact on 1-TC v5e/v6e.
    two_way = max(8, (((rows + 1) // 2) + 7) // 8 * 8)
    return min(max_rows, two_way)


def _pick_chunk_rows(block_rows):
    for c in (32, 16, 8):
        if block_rows % c == 0:
            return c
    return 8


def ar_gas_forward_batched(last_mu, last_sigma2, gas_params, k,
                           out_dtype=jnp.float32, general=False):
    """B independent AR_GAS recursions in one kernel call.

    Returns (mu, sigma), each of shape (k, B) -- step-major, matching the kernel's
    output layout so no transpose pass over the (store-dominated) output is needed.
    """
    (alpha_mu, alpha_sigma, beta_mu, beta_sigma,
     omega_mu, omega_sigma, nu, norm_strength) = gas_params

    # norm_strength given as a plain Python number -> specialize exponent statically.
    ns_static = float(norm_strength) if isinstance(norm_strength, (int, float)) else None

    params = jnp.stack([jnp.asarray(p, jnp.float32).reshape(())
                        for p in (alpha_mu, alpha_sigma, beta_mu, beta_sigma,
                                  omega_mu, omega_sigma, nu, norm_strength)])

    last_mu = jnp.asarray(last_mu, jnp.float32).reshape(-1)
    last_sigma2 = jnp.asarray(last_sigma2, jnp.float32).reshape(-1)
    B = last_mu.shape[0]

    rows = pl.cdiv(B, _LANES)
    block_rows = _pick_block_rows(rows, k)
    chunk_rows = _pick_chunk_rows(block_rows)
    rows_padded = pl.cdiv(rows, block_rows) * block_rows
    b_pad = rows_padded * _LANES

    # Pad batch; sigma2 padded with ones so padded lanes stay numerically benign.
    mu0 = jnp.zeros((b_pad,), jnp.float32).at[:B].set(last_mu).reshape(rows_padded, _LANES)
    s20 = jnp.ones((b_pad,), jnp.float32).at[:B].set(last_sigma2).reshape(rows_padded, _LANES)

    grid = (rows_padded // block_rows,)
    kernel = functools.partial(_ar_gas_kernel, k, chunk_rows, ns_static, general)
    mu_out, sig_out = pl.pallas_call(
        kernel,
        out_shape=(jax.ShapeDtypeStruct((k, rows_padded, _LANES), out_dtype),
                   jax.ShapeDtypeStruct((k, rows_padded, _LANES), out_dtype)),
        grid=grid,
        in_specs=[
            pl.BlockSpec(memory_space=pltpu.MemorySpace.SMEM),       # gas params
            pl.BlockSpec((block_rows, _LANES), lambda i: (i, 0)),    # mu0
            pl.BlockSpec((block_rows, _LANES), lambda i: (i, 0)),    # sigma2_0
        ],
        out_specs=(pl.BlockSpec((k, block_rows, _LANES), lambda i: (0, i, 0)),
                   pl.BlockSpec((k, block_rows, _LANES), lambda i: (0, i, 0))),
        compiler_params=pltpu.CompilerParams(dimension_semantics=("parallel",)),
    )(params, mu0, s20)

    mu_steps = mu_out.reshape(k, b_pad)[:, :B]       # (k, B)
    sigma_steps = sig_out.reshape(k, b_pad)[:, :B]   # (k, B)
    return mu_steps, sigma_steps


def ar_gas_forward(last_mu, last_sigma2, gas_params, k):
    """Pallas implementation of AR_GAS.forward (single instance, matches module shapes)."""
    mu_b, sig_b = ar_gas_forward_batched(
        jnp.reshape(jnp.asarray(last_mu, jnp.float32), (1,)),
        jnp.reshape(jnp.asarray(last_sigma2, jnp.float32), (1,)),
        gas_params, k)
    return mu_b[:, 0], sig_b[:, 0]                   # (k,), (k,)


def _reference(last_mu, last_sigma2, gas_params, k):
    """Pure-JAX reference of the same recursion (mirrors the PyTorch loop).
    Works on scalars or (B,) arrays; returns (k, ...) stacked steps."""
    (a_mu, a_s, b_mu, b_s, o_mu, o_s, nu, ns) = [jnp.asarray(p, jnp.float32)
                                                 for p in gas_params]
    mu = jnp.asarray(last_mu, jnp.float32)
    s2 = jnp.asarray(last_sigma2, jnp.float32)
    mus, s2s = [], []
    for _ in range(k):
        s2f = jnp.maximum(s2, 1e-6)
        y = mu
        eps = y - mu
        w = ((nu + 1.0) / nu) / (1.0 + eps * eps / (nu * s2f))
        scale = s2f ** (-ns)
        s_mu = w * eps * scale
        s_s2 = (w * eps * eps - s2f) * scale
        mu = o_mu + b_mu * mu + a_mu * s_mu
        s2 = jnp.maximum(o_s + b_s * s2f + a_s * s_s2, 1e-6)
        mus.append(mu)
        s2s.append(s2)
    return jnp.stack(mus), jnp.sqrt(jnp.stack(s2s))


if __name__ == "__main__":
    k = 8
    key = jax.random.PRNGKey(0)
    k1, k2, k3, k4 = jax.random.split(key, 4)

    # --- single instance: matches the PyTorch module's forward signature ---
    last_mu = jax.random.normal(k1, ()).astype(jnp.float32)
    last_sigma2 = (jnp.abs(jax.random.normal(k2, ())) + 0.5).astype(jnp.float32)
    # (alpha_mu, alpha_sigma, beta_mu, beta_sigma, omega_mu, omega_sigma, nu, norm_strength)
    gas_params = (0.10, 0.10, 0.85, 0.90, 0.02, 0.05, 5.0, 0.5)   # ns=0.5 -> sqrt fast path

    mu_pred, sigma_pred = ar_gas_forward(last_mu, last_sigma2, gas_params, k)
    jax.block_until_ready((mu_pred, sigma_pred))

    mu_ref, sigma_ref = _reference(last_mu, last_sigma2, gas_params, k)
    assert mu_pred.shape == (k,) and sigma_pred.shape == (k,)
    assert jnp.allclose(mu_pred, mu_ref, rtol=1e-5, atol=1e-5)
    assert jnp.allclose(sigma_pred, sigma_ref, rtol=1e-5, atol=1e-5)

    # --- the general (non-specialized) Student-t update path stays available ---
    mu_g, sig_g = ar_gas_forward_batched(
        jnp.reshape(last_mu, (1,)), jnp.reshape(last_sigma2, (1,)),
        gas_params, k, general=True)
    jax.block_until_ready((mu_g, sig_g))
    assert jnp.allclose(mu_g[:, 0], mu_ref, rtol=1e-5, atol=1e-5)
    assert jnp.allclose(sig_g[:, 0], sigma_ref, rtol=1e-5, atol=1e-5)

    # --- batched: many independent AR_GAS instances in ONE kernel call ---
    B = 300
    last_mu_b = jax.random.normal(k3, (B,)).astype(jnp.float32)
    last_s2_b = (jnp.abs(jax.random.normal(k4, (B,))) + 0.5).astype(jnp.float32)
    # numpy-scalar params exercise the runtime (non-specialized) norm_strength path
    gas_params_rt = tuple(jnp.float32(p)
                          for p in (0.10, 0.10, 0.85, 0.90, 0.02, 0.05, 5.0, 0.75))
    mu_b, sig_b = ar_gas_forward_batched(last_mu_b, last_s2_b, gas_params_rt, k)
    jax.block_until_ready((mu_b, sig_b))

    mu_bref, sig_bref = _reference(last_mu_b, last_s2_b, gas_params_rt, k)   # (k, B)
    assert mu_b.shape == (k, B) and sig_b.shape == (k, B)
    assert jnp.allclose(mu_b, mu_bref, rtol=1e-5, atol=1e-5)
    assert jnp.allclose(sig_b, sig_bref, rtol=1e-5, atol=1e-5)

    print("KERNEL_OK")
</pallas_src>

<mosaic_0001>
module attributes {stable_mosaic.version = 11 : i64} {
  func.func @_ar_gas_kernel(%arg0: i32, %arg1: memref<8xf32, #tpu.memory_space<smem>>, %arg2: memref<8x128xf32, #tpu.memory_space<vmem>>, %arg3: memref<8x128xf32, #tpu.memory_space<vmem>>, %arg4: memref<8x8x128xf32, #tpu.memory_space<vmem>>, %arg5: memref<8x8x128xf32, #tpu.memory_space<vmem>>) attributes {dimension_semantics = [#tpu.dimension_semantics<parallel>], iteration_bounds = array<i64: 1>, scalar_prefetch = 0 : i64, scratch_operands = 0 : i64, tpu.core_type = #tpu.core_type<tc>, window_params = [{transform_indices = @transform_0, window_bounds = array<i64: 8>}, {transform_indices = @transform_1, window_bounds = array<i64: 8, 128>}, {transform_indices = @transform_2, window_bounds = array<i64: 8, 128>}, {transform_indices = @transform_3, window_bounds = array<i64: 8, 8, 128>}, {transform_indices = @transform_4, window_bounds = array<i64: 8, 8, 128>}]} {
    %c1 = arith.constant 1 : index
    %0 = memref.load %arg1[%c1] : memref<8xf32, #tpu.memory_space<smem>>
    %c2 = arith.constant 2 : index
    %1 = memref.load %arg1[%c2] : memref<8xf32, #tpu.memory_space<smem>>
    %c3 = arith.constant 3 : index
    %2 = memref.load %arg1[%c3] : memref<8xf32, #tpu.memory_space<smem>>
    %c4 = arith.constant 4 : index
    %3 = memref.load %arg1[%c4] : memref<8xf32, #tpu.memory_space<smem>>
    %c5 = arith.constant 5 : index
    %4 = memref.load %arg1[%c5] : memref<8xf32, #tpu.memory_space<smem>>
    %c0 = arith.constant 0 : index
    %c0_0 = arith.constant 0 : index
    %5 = vector.load %arg2[%c0, %c0_0] : memref<8x128xf32, #tpu.memory_space<vmem>>, vector<8x128xf32>
    %c0_1 = arith.constant 0 : index
    %c0_2 = arith.constant 0 : index
    %6 = vector.load %arg3[%c0_1, %c0_2] : memref<8x128xf32, #tpu.memory_space<vmem>>, vector<8x128xf32>
    %cst = arith.constant 9.99999997E-7 : f32
    %7 = vector.broadcast %cst : f32 to vector<8x128xf32>
    %8 = arith.maximumf %6, %7 : vector<8x128xf32>
    %9 = math.sqrt %8 : vector<8x128xf32>
    %cst_3 = arith.constant 0.000000e+00 : f32
    %10 = vector.broadcast %cst_3 : f32 to vector<8x128xf32>
    %11 = arith.subf %10, %9 : vector<8x128xf32>
    %12 = vector.broadcast %1 : f32 to vector<8x128xf32>
    %13 = arith.mulf %12, %5 : vector<8x128xf32>
    %14 = vector.broadcast %3 : f32 to vector<8x128xf32>
    %15 = arith.addf %14, %13 : vector<8x128xf32>
    %16 = vector.broadcast %2 : f32 to vector<8x128xf32>
    %17 = arith.mulf %16, %8 : vector<8x128xf32>
    %18 = vector.broadcast %4 : f32 to vector<8x128xf32>
    %19 = arith.addf %18, %17 : vector<8x128xf32>
    %20 = vector.broadcast %0 : f32 to vector<8x128xf32>
    %21 = arith.mulf %20, %11 : vector<8x128xf32>
    %22 = arith.addf %19, %21 : vector<8x128xf32>
    %cst_4 = arith.constant 9.99999997E-7 : f32
    %23 = vector.broadcast %cst_4 : f32 to vector<8x128xf32>
    %24 = arith.maximumf %22, %23 : vector<8x128xf32>
    %c0_5 = arith.constant 0 : index
    %c0_6 = arith.constant 0 : index
    %c0_7 = arith.constant 0 : index
    %25 = vector.load %arg4[%c0_5, %c0_6, %c0_7] : memref<8x8x128xf32, #tpu.memory_space<vmem>>, vector<1x8x128xf32>
    %26 = vector.shape_cast %25 : vector<1x8x128xf32> to vector<8x128xf32>
    %27 = vector.shape_cast %15 : vector<8x128xf32> to vector<1x8x128xf32>
    tpu.vector_store %arg4[%c0_5, %c0_6, %c0_7], %27 {strides = array<i32>} : memref<8x8x128xf32, #tpu.memory_space<vmem>>, vector<1x8x128xf32>,
    %28 = math.sqrt %24 : vector<8x128xf32>
    %c0_8 = arith.constant 0 : index
    %c0_9 = arith.constant 0 : index
    %c0_10 = arith.constant 0 : index
    %29 = vector.load %arg5[%c0_8, %c0_9, %c0_10] : memref<8x8x128xf32, #tpu.memory_space<vmem>>, vector<1x8x128xf32>
    %30 = vector.shape_cast %29 : vector<1x8x128xf32> to vector<8x128xf32>
    %31 = vector.shape_cast %28 : vector<8x128xf32> to vector<1x8x128xf32>
    tpu.vector_store %arg5[%c0_8, %c0_9, %c0_10], %31 {strides = array<i32>} : memref<8x8x128xf32, #tpu.memory_space<vmem>>, vector<1x8x128xf32>,
    %cst_11 = arith.constant 9.99999997E-7 : f32
    %32 = vector.broadcast %cst_11 : f32 to vector<8x128xf32>
    %33 = arith.maximumf %24, %32 : vector<8x128xf32>
    %34 = math.sqrt %33 : vector<8x128xf32>
    %cst_12 = arith.constant 0.000000e+00 : f32
    %35 = vector.broadcast %cst_12 : f32 to vector<8x128xf32>
    %36 = arith.subf %35, %34 : vector<8x128xf32>
    %37 = vector.broadcast %1 : f32 to vector<8x128xf32>
    %38 = arith.mulf %37, %15 : vector<8x128xf32>
    %39 = vector.broadcast %3 : f32 to vector<8x128xf32>
    %40 = arith.addf %39, %38 : vector<8x128xf32>
    %41 = vector.broadcast %2 : f32 to vector<8x128xf32>
    %42 = arith.mulf %41, %33 : vector<8x128xf32>
    %43 = vector.broadcast %4 : f32 to vector<8x128xf32>
    %44 = arith.addf %43, %42 : vector<8x128xf32>
    %45 = vector.broadcast %0 : f32 to vector<8x128xf32>
    %46 = arith.mulf %45, %36 : vector<8x128xf32>
    %47 = arith.addf %44, %46 : vector<8x128xf32>
    %cst_13 = arith.constant 9.99999997E-7 : f32
    %48 = vector.broadcast %cst_13 : f32 to vector<8x128xf32>
    %49 = arith.maximumf %47, %48 : vector<8x128xf32>
    %c1_14 = arith.constant 1 : index
    %c0_15 = arith.constant 0 : index
    %c0_16 = arith.constant 0 : index
    %50 = vector.load %arg4[%c1_14, %c0_15, %c0_16] : memref<8x8x128xf32, #tpu.memory_space<vmem>>, vector<1x8x128xf32>
    %51 = vector.shape_cast %50 : vector<1x8x128xf32> to vector<8x128xf32>
    %52 = vector.shape_cast %40 : vector<8x128xf32> to vector<1x8x128xf32>
    tpu.vector_store %arg4[%c1_14, %c0_15, %c0_16], %52 {strides = array<i32>} : memref<8x8x128xf32, #tpu.memory_space<vmem>>, vector<1x8x128xf32>,
    %53 = math.sqrt %49 : vector<8x128xf32>
    %c1_17 = arith.constant 1 : index
    %c0_18 = arith.constant 0 : index
    %c0_19 = arith.constant 0 : index
    %54 = vector.load %arg5[%c1_17, %c0_18, %c0_19] : memref<8x8x128xf32, #tpu.memory_space<vmem>>, vector<1x8x128xf32>
    %55 = vector.shape_cast %54 : vector<1x8x128xf32> to vector<8x128xf32>
    %56 = vector.shape_cast %53 : vector<8x128xf32> to vector<1x8x128xf32>
    tpu.vector_store %arg5[%c1_17, %c0_18, %c0_19], %56 {strides = array<i32>} : memref<8x8x128xf32, #tpu.memory_space<vmem>>, vector<1x8x128xf32>,
    %cst_20 = arith.constant 9.99999997E-7 : f32
    %57 = vector.broadcast %cst_20 : f32 to vector<8x128xf32>
    %58 = arith.maximumf %49, %57 : vector<8x128xf32>
    %59 = math.sqrt %58 : vector<8x128xf32>
    %cst_21 = arith.constant 0.000000e+00 : f32
    %60 = vector.broadcast %cst_21 : f32 to vector<8x128xf32>
    %61 = arith.subf %60, %59 : vector<8x128xf32>
    %62 = vector.broadcast %1 : f32 to vector<8x128xf32>
    %63 = arith.mulf %62, %40 : vector<8x128xf32>
    %64 = vector.broadcast %3 : f32 to vector<8x128xf32>
    %65 = arith.addf %64, %63 : vector<8x128xf32>
    %66 = vector.broadcast %2 : f32 to vector<8x128xf32>
    %67 = arith.mulf %66, %58 : vector<8x128xf32>
    %68 = vector.broadcast %4 : f32 to vector<8x128xf32>
    %69 = arith.addf %68, %67 : vector<8x128xf32>
    %70 = vector.broadcast %0 : f32 to vector<8x128xf32>
    %71 = arith.mulf %70, %61 : vector<8x128xf32>
    %72 = arith.addf %69, %71 : vector<8x128xf32>
    %cst_22 = arith.constant 9.99999997E-7 : f32
    %73 = vector.broadcast %cst_22 : f32 to vector<8x128xf32>
    %74 = arith.maximumf %72, %73 : vector<8x128xf32>
    %c2_23 = arith.constant 2 : index
    %c0_24 = arith.constant 0 : index
    %c0_25 = arith.constant 0 : index
    %75 = vector.load %arg4[%c2_23, %c0_24, %c0_25] : memref<8x8x128xf32, #tpu.memory_space<vmem>>, vector<1x8x128xf32>
    %76 = vector.shape_cast %75 : vector<1x8x128xf32> to vector<8x128xf32>
    %77 = vector.shape_cast %65 : vector<8x128xf32> to vector<1x8x128xf32>
    tpu.vector_store %arg4[%c2_23, %c0_24, %c0_25], %77 {strides = array<i32>} : memref<8x8x128xf32, #tpu.memory_space<vmem>>, vector<1x8x128xf32>,
    %78 = math.sqrt %74 : vector<8x128xf32>
    %c2_26 = arith.constant 2 : index
    %c0_27 = arith.constant 0 : index
    %c0_28 = arith.constant 0 : index
    %79 = vector.load %arg5[%c2_26, %c0_27, %c0_28] : memref<8x8x128xf32, #tpu.memory_space<vmem>>, vector<1x8x128xf32>
    %80 = vector.shape_cast %79 : vector<1x8x128xf32> to vector<8x128xf32>
    %81 = vector.shape_cast %78 : vector<8x128xf32> to vector<1x8x128xf32>
    tpu.vector_store %arg5[%c2_26, %c0_27, %c0_28], %81 {strides = array<i32>} : memref<8x8x128xf32, #tpu.memory_space<vmem>>, vector<1x8x128xf32>,
    %cst_29 = arith.constant 9.99999997E-7 : f32
    %82 = vector.broadcast %cst_29 : f32 to vector<8x128xf32>
    %83 = arith.maximumf %74, %82 : vector<8x128xf32>
    %84 = math.sqrt %83 : vector<8x128xf32>
    %cst_30 = arith.constant 0.000000e+00 : f32
    %85 = vector.broadcast %cst_30 : f32 to vector<8x128xf32>
    %86 = arith.subf %85, %84 : vector<8x128xf32>
    %87 = vector.broadcast %1 : f32 to vector<8x128xf32>
    %88 = arith.mulf %87, %65 : vector<8x128xf32>
    %89 = vector.broadcast %3 : f32 to vector<8x128xf32>
    %90 = arith.addf %89, %88 : vector<8x128xf32>
    %91 = vector.broadcast %2 : f32 to vector<8x128xf32>
    %92 = arith.mulf %91, %83 : vector<8x128xf32>
    %93 = vector.broadcast %4 : f32 to vector<8x128xf32>
    %94 = arith.addf %93, %92 : vector<8x128xf32>
    %95 = vector.broadcast %0 : f32 to vector<8x128xf32>
    %96 = arith.mulf %95, %86 : vector<8x128xf32>
    %97 = arith.addf %94, %96 : vector<8x128xf32>
    %cst_31 = arith.constant 9.99999997E-7 : f32
    %98 = vector.broadcast %cst_31 : f32 to vector<8x128xf32>
    %99 = arith.maximumf %97, %98 : vector<8x128xf32>
    %c3_32 = arith.constant 3 : index
    %c0_33 = arith.constant 0 : index
    %c0_34 = arith.constant 0 : index
    %100 = vector.load %arg4[%c3_32, %c0_33, %c0_34] : memref<8x8x128xf32, #tpu.memory_space<vmem>>, vector<1x8x128xf32>
    %101 = vector.shape_cast %100 : vector<1x8x128xf32> to vector<8x128xf32>
    %102 = vector.shape_cast %90 : vector<8x128xf32> to vector<1x8x128xf32>
    tpu.vector_store %arg4[%c3_32, %c0_33, %c0_34], %102 {strides = array<i32>} : memref<8x8x128xf32, #tpu.memory_space<vmem>>, vector<1x8x128xf32>,
    %103 = math.sqrt %99 : vector<8x128xf32>
    %c3_35 = arith.constant 3 : index
    %c0_36 = arith.constant 0 : index
    %c0_37 = arith.constant 0 : index
    %104 = vector.load %arg5[%c3_35, %c0_36, %c0_37] : memref<8x8x128xf32, #tpu.memory_space<vmem>>, vector<1x8x128xf32>
    %105 = vector.shape_cast %104 : vector<1x8x128xf32> to vector<8x128xf32>
    %106 = vector.shape_cast %103 : vector<8x128xf32> to vector<1x8x128xf32>
    tpu.vector_store %arg5[%c3_35, %c0_36, %c0_37], %106 {strides = array<i32>} : memref<8x8x128xf32, #tpu.memory_space<vmem>>, vector<1x8x128xf32>,
    %cst_38 = arith.constant 9.99999997E-7 : f32
    %107 = vector.broadcast %cst_38 : f32 to vector<8x128xf32>
    %108 = arith.maximumf %99, %107 : vector<8x128xf32>
    %109 = math.sqrt %108 : vector<8x128xf32>
    %cst_39 = arith.constant 0.000000e+00 : f32
    %110 = vector.broadcast %cst_39 : f32 to vector<8x128xf32>
    %111 = arith.subf %110, %109 : vector<8x128xf32>
    %112 = vector.broadcast %1 : f32 to vector<8x128xf32>
    %113 = arith.mulf %112, %90 : vector<8x128xf32>
    %114 = vector.broadcast %3 : f32 to vector<8x128xf32>
    %115 = arith.addf %114, %113 : vector<8x128xf32>
    %116 = vector.broadcast %2 : f32 to vector<8x128xf32>
    %117 = arith.mulf %116, %108 : vector<8x128xf32>
    %118 = vector.broadcast %4 : f32 to vector<8x128xf32>
    %119 = arith.addf %118, %117 : vector<8x128xf32>
    %120 = vector.broadcast %0 : f32 to vector<8x128xf32>
    %121 = arith.mulf %120, %111 : vector<8x128xf32>
    %122 = arith.addf %119, %121 : vector<8x128xf32>
    %cst_40 = arith.constant 9.99999997E-7 : f32
    %123 = vector.broadcast %cst_40 : f32 to vector<8x128xf32>
    %124 = arith.maximumf %122, %123 : vector<8x128xf32>
    %c4_41 = arith.constant 4 : index
    %c0_42 = arith.constant 0 : index
    %c0_43 = arith.constant 0 : index
    %125 = vector.load %arg4[%c4_41, %c0_42, %c0_43] : memref<8x8x128xf32, #tpu.memory_space<vmem>>, vector<1x8x128xf32>
    %126 = vector.shape_cast %125 : vector<1x8x128xf32> to vector<8x128xf32>
    %127 = vector.shape_cast %115 : vector<8x128xf32> to vector<1x8x128xf32>
    tpu.vector_store %arg4[%c4_41, %c0_42, %c0_43], %127 {strides = array<i32>} : memref<8x8x128xf32, #tpu.memory_space<vmem>>, vector<1x8x128xf32>,
    %128 = math.sqrt %124 : vector<8x128xf32>
    %c4_44 = arith.constant 4 : index
    %c0_45 = arith.constant 0 : index
    %c0_46 = arith.constant 0 : index
    %129 = vector.load %arg5[%c4_44, %c0_45, %c0_46] : memref<8x8x128xf32, #tpu.memory_space<vmem>>, vector<1x8x128xf32>
    %130 = vector.shape_cast %129 : vector<1x8x128xf32> to vector<8x128xf32>
    %131 = vector.shape_cast %128 : vector<8x128xf32> to vector<1x8x128xf32>
    tpu.vector_store %arg5[%c4_44, %c0_45, %c0_46], %131 {strides = array<i32>} : memref<8x8x128xf32, #tpu.memory_space<vmem>>, vector<1x8x128xf32>,
    %cst_47 = arith.constant 9.99999997E-7 : f32
    %132 = vector.broadcast %cst_47 : f32 to vector<8x128xf32>
    %133 = arith.maximumf %124, %132 : vector<8x128xf32>
    %134 = math.sqrt %133 : vector<8x128xf32>
    %cst_48 = arith.constant 0.000000e+00 : f32
    %135 = vector.broadcast %cst_48 : f32 to vector<8x128xf32>
    %136 = arith.subf %135, %134 : vector<8x128xf32>
    %137 = vector.broadcast %1 : f32 to vector<8x128xf32>
    %138 = arith.mulf %137, %115 : vector<8x128xf32>
    %139 = vector.broadcast %3 : f32 to vector<8x128xf32>
    %140 = arith.addf %139, %138 : vector<8x128xf32>
    %141 = vector.broadcast %2 : f32 to vector<8x128xf32>
    %142 = arith.mulf %141, %133 : vector<8x128xf32>
    %143 = vector.broadcast %4 : f32 to vector<8x128xf32>
    %144 = arith.addf %143, %142 : vector<8x128xf32>
    %145 = vector.broadcast %0 : f32 to vector<8x128xf32>
    %146 = arith.mulf %145, %136 : vector<8x128xf32>
    %147 = arith.addf %144, %146 : vector<8x128xf32>
    %cst_49 = arith.constant 9.99999997E-7 : f32
    %148 = vector.broadcast %cst_49 : f32 to vector<8x128xf32>
    %149 = arith.maximumf %147, %148 : vector<8x128xf32>
    %c5_50 = arith.constant 5 : index
    %c0_51 = arith.constant 0 : index
    %c0_52 = arith.constant 0 : index
    %150 = vector.load %arg4[%c5_50, %c0_51, %c0_52] : memref<8x8x128xf32, #tpu.memory_space<vmem>>, vector<1x8x128xf32>
    %151 = vector.shape_cast %150 : vector<1x8x128xf32> to vector<8x128xf32>
    %152 = vector.shape_cast %140 : vector<8x128xf32> to vector<1x8x128xf32>
    tpu.vector_store %arg4[%c5_50, %c0_51, %c0_52], %152 {strides = array<i32>} : memref<8x8x128xf32, #tpu.memory_space<vmem>>, vector<1x8x128xf32>,
    %153 = math.sqrt %149 : vector<8x128xf32>
    %c5_53 = arith.constant 5 : index
    %c0_54 = arith.constant 0 : index
    %c0_55 = arith.constant 0 : index
    %154 = vector.load %arg5[%c5_53, %c0_54, %c0_55] : memref<8x8x128xf32, #tpu.memory_space<vmem>>, vector<1x8x128xf32>
    %155 = vector.shape_cast %154 : vector<1x8x128xf32> to vector<8x128xf32>
    %156 = vector.shape_cast %153 : vector<8x128xf32> to vector<1x8x128xf32>
    tpu.vector_store %arg5[%c5_53, %c0_54, %c0_55], %156 {strides = array<i32>} : memref<8x8x128xf32, #tpu.memory_space<vmem>>, vector<1x8x128xf32>,
    %cst_56 = arith.constant 9.99999997E-7 : f32
    %157 = vector.broadcast %cst_56 : f32 to vector<8x128xf32>
    %158 = arith.maximumf %149, %157 : vector<8x128xf32>
    %159 = math.sqrt %158 : vector<8x128xf32>
    %cst_57 = arith.constant 0.000000e+00 : f32
    %160 = vector.broadcast %cst_57 : f32 to vector<8x128xf32>
    %161 = arith.subf %160, %159 : vector<8x128xf32>
    %162 = vector.broadcast %1 : f32 to vector<8x128xf32>
    %163 = arith.mulf %162, %140 : vector<8x128xf32>
    %164 = vector.broadcast %3 : f32 to vector<8x128xf32>
    %165 = arith.addf %164, %163 : vector<8x128xf32>
    %166 = vector.broadcast %2 : f32 to vector<8x128xf32>
    %167 = arith.mulf %166, %158 : vector<8x128xf32>
    %168 = vector.broadcast %4 : f32 to vector<8x128xf32>
    %169 = arith.addf %168, %167 : vector<8x128xf32>
    %170 = vector.broadcast %0 : f32 to vector<8x128xf32>
    %171 = arith.mulf %170, %161 : vector<8x128xf32>
    %172 = arith.addf %169, %171 : vector<8x128xf32>
    %cst_58 = arith.constant 9.99999997E-7 : f32
    %173 = vector.broadcast %cst_58 : f32 to vector<8x128xf32>
    %174 = arith.maximumf %172, %173 : vector<8x128xf32>
    %c6 = arith.constant 6 : index
    %c0_59 = arith.constant 0 : index
    %c0_60 = arith.constant 0 : index
    %175 = vector.load %arg4[%c6, %c0_59, %c0_60] : memref<8x8x128xf32, #tpu.memory_space<vmem>>, vector<1x8x128xf32>
    %176 = vector.shape_cast %175 : vector<1x8x128xf32> to vector<8x128xf32>
    %177 = vector.shape_cast %165 : vector<8x128xf32> to vector<1x8x128xf32>
    tpu.vector_store %arg4[%c6, %c0_59, %c0_60], %177 {strides = array<i32>} : memref<8x8x128xf32, #tpu.memory_space<vmem>>, vector<1x8x128xf32>,
    %178 = math.sqrt %174 : vector<8x128xf32>
    %c6_61 = arith.constant 6 : index
    %c0_62 = arith.constant 0 : index
    %c0_63 = arith.constant 0 : index
    %179 = vector.load %arg5[%c6_61, %c0_62, %c0_63] : memref<8x8x128xf32, #tpu.memory_space<vmem>>, vector<1x8x128xf32>
    %180 = vector.shape_cast %179 : vector<1x8x128xf32> to vector<8x128xf32>
    %181 = vector.shape_cast %178 : vector<8x128xf32> to vector<1x8x128xf32>
    tpu.vector_store %arg5[%c6_61, %c0_62, %c0_63], %181 {strides = array<i32>} : memref<8x8x128xf32, #tpu.memory_space<vmem>>, vector<1x8x128xf32>,
    %cst_64 = arith.constant 9.99999997E-7 : f32
    %182 = vector.broadcast %cst_64 : f32 to vector<8x128xf32>
    %183 = arith.maximumf %174, %182 : vector<8x128xf32>
    %184 = math.sqrt %183 : vector<8x128xf32>
    %cst_65 = arith.constant 0.000000e+00 : f32
    %185 = vector.broadcast %cst_65 : f32 to vector<8x128xf32>
    %186 = arith.subf %185, %184 : vector<8x128xf32>
    %187 = vector.broadcast %1 : f32 to vector<8x128xf32>
    %188 = arith.mulf %187, %165 : vector<8x128xf32>
    %189 = vector.broadcast %3 : f32 to vector<8x128xf32>
    %190 = arith.addf %189, %188 : vector<8x128xf32>
    %191 = vector.broadcast %2 : f32 to vector<8x128xf32>
    %192 = arith.mulf %191, %183 : vector<8x128xf32>
    %193 = vector.broadcast %4 : f32 to vector<8x128xf32>
    %194 = arith.addf %193, %192 : vector<8x128xf32>
    %195 = vector.broadcast %0 : f32 to vector<8x128xf32>
    %196 = arith.mulf %195, %186 : vector<8x128xf32>
    %197 = arith.addf %194, %196 : vector<8x128xf32>
    %cst_66 = arith.constant 9.99999997E-7 : f32
    %198 = vector.broadcast %cst_66 : f32 to vector<8x128xf32>
    %199 = arith.maximumf %197, %198 : vector<8x128xf32>
    %c7 = arith.constant 7 : index
    %c0_67 = arith.constant 0 : index
    %c0_68 = arith.constant 0 : index
    %200 = vector.load %arg4[%c7, %c0_67, %c0_68] : memref<8x8x128xf32, #tpu.memory_space<vmem>>, vector<1x8x128xf32>
    %201 = vector.shape_cast %200 : vector<1x8x128xf32> to vector<8x128xf32>
    %202 = vector.shape_cast %190 : vector<8x128xf32> to vector<1x8x128xf32>
    tpu.vector_store %arg4[%c7, %c0_67, %c0_68], %202 {strides = array<i32>} : memref<8x8x128xf32, #tpu.memory_space<vmem>>, vector<1x8x128xf32>,
    %203 = math.sqrt %199 : vector<8x128xf32>
    %c7_69 = arith.constant 7 : index
    %c0_70 = arith.constant 0 : index
    %c0_71 = arith.constant 0 : index
    %204 = vector.load %arg5[%c7_69, %c0_70, %c0_71] : memref<8x8x128xf32, #tpu.memory_space<vmem>>, vector<1x8x128xf32>
    %205 = vector.shape_cast %204 : vector<1x8x128xf32> to vector<8x128xf32>
    %206 = vector.shape_cast %203 : vector<8x128xf32> to vector<1x8x128xf32>
    tpu.vector_store %arg5[%c7_69, %c0_70, %c0_71], %206 {strides = array<i32>} : memref<8x8x128xf32, #tpu.memory_space<vmem>>, vector<1x8x128xf32>,
    return
  }
  func.func @transform_0(%arg0: i32) -> i32 {
    %c0_i32 = arith.constant 0 : i32
    %c0_i32_0 = arith.constant 0 : i32
    return %c0_i32 : i32
  }
  func.func @transform_1(%arg0: i32) -> (i32, i32) {
    %c0_i32 = arith.constant 0 : i32
    %c0_i32_0 = arith.constant 0 : i32
    return %arg0, %c0_i32 : i32, i32
  }
  func.func @transform_2(%arg0: i32) -> (i32, i32) {
    %c0_i32 = arith.constant 0 : i32
    %c0_i32_0 = arith.constant 0 : i32
    return %arg0, %c0_i32 : i32, i32
  }
  func.func @transform_3(%arg0: i32) -> (i32, i32, i32) {
    %c0_i32 = arith.constant 0 : i32
    %c0_i32_0 = arith.constant 0 : i32
    %c0_i32_1 = arith.constant 0 : i32
    return %c0_i32, %arg0, %c0_i32_0 : i32, i32, i32
  }
  func.func @transform_4(%arg0: i32) -> (i32, i32, i32) {
    %c0_i32 = arith.constant 0 : i32
    %c0_i32_0 = arith.constant 0 : i32
    %c0_i32_1 = arith.constant 0 : i32
    return %c0_i32, %arg0, %c0_i32_0 : i32, i32, i32
  }
}

</mosaic_0001>

<bundles_post_ra>
// kernel: tpu_custom_call.1
= control target key start
LH: loop header
LB: loop body
LE: loop exit
PB: predicated region body
PF: predicated region fallthrough
CT: control target
= control target key end

     0   :  { %10 = vsyncpa [#allocation5], 0  ;;  %s614_s0 = inlined_call_operand.hbm [shape: f32[8], index: 0, kind: input, shape index: {}]   ;;  %s615_s1 = inlined_call_operand.hbm [shape: f32[8,128], index: 1, kind: input, shape index: {}]   ;;  %s616_s2 = inlined_call_operand.hbm [shape: f32[8,128], index: 2, kind: input, shape index: {}]   ;;  %s617_s3 = inlined_call_operand.hbm [shape: f32[8,8,128], index: 3, kind: output, shape index: {0}]   ;;  %s618_s4 = inlined_call_operand.hbm [shape: f32[8,8,128], index: 4, kind: output, shape index: {1}]  }
   0x1   :  { %11 = vsyncpa [#allocation3], 0 }
   0x2   :  { %12 = vsyncpa [#allocation8], 0 }
   0x3   :  { %13 = vsyncpa [#allocation4], 0 }
   0x4   :  { %14 = vsyncpa [#allocation11], 0  ;;  %s358_s17 = scalar_lea.hbm %s614_s0, 16 }
   0x5   :  { %p359_p0 = scmp.ne.s32.totalorder %s614_s0, %s358_s17  ;;  %p362_p1 = scmp.lt.u32.totalorder %s358_s17, %s614_s0 }
   0x7   :  { %p364_p2 = pnand %p362_p1, %p359_p0 }
   0x9   :  { %367 = shalt.err (!%p364_p2)
}
   0xa   :  { %s466_s22 = smov [#allocation2]   ;;  %s467_s25 = smov [#allocation6]  }
   0xb   :  { %22 = dma.hbm_to_smem %s614_s0, 16, %s466_s22, [#allocation5]  }
   0xc   :  { %s29_s26 = sshll.u32 %s467_s25, 4  ;;  %s468_s27 = smov [#allocation7]   ;;  %s30_s26 = int_to_ptr.vmem [resolvable:$true] %s29_s26 }
   0xd   :  { %s39_s28 = sshll.u32 %s468_s27, 4  ;;  %s368_s5 = scalar_lea.hbm %s615_s1, 128  ;;  %s40_s28 = int_to_ptr.vmem [resolvable:$true] %s39_s28 }
   0xe   :  { %p369_p3 = scmp.ne.s32.totalorder %s615_s1, %s368_s5  ;;  %p372_p4 = scmp.lt.u32.totalorder %s368_s5, %s615_s1 }
  0x10   :  { %p374_p5 = pnand %p372_p4, %p369_p3 }
  0x12   :  { %377 = shalt.err (!%p374_p5)
}
  0x13   :  { %s378_s0 = scalar_lea.vmem %s30_s26, 128  ;;  %p383_p7 = scmp.lt.s32.totalorder %s30_s26, %s30_s26 }
  0x14   :  { %p379_p6 = scmp.ne.s32.totalorder %s30_s26, %s378_s0  ;;  %p384_p8 = scmp.lt.s32.totalorder %s378_s0, %s378_s0 }
  0x16   :  { %p385_p9 = por %p384_p8, %p383_p7 }
  0x18   :  { %p386_p10 = pnand %p385_p9, %p379_p6 }
  0x1a   :  { %389 = shalt.err (!%p386_p10)
}
  0x1b   :  { %32 = dma.hbm_to_vmem [thread:$0]  %s615_s1, 128, %s30_s26, [#allocation3]  }
  0x1c   :  { %s390_s14 = scalar_lea.hbm %s616_s2, 128 }
  0x1d   :  { %p391_p11 = scmp.ne.s32.totalorder %s616_s2, %s390_s14  ;;  %p394_p12 = scmp.lt.u32.totalorder %s390_s14, %s616_s2 }
  0x1f   :  { %p396_p13 = pnand %p394_p12, %p391_p11 }
  0x21   :  { %399 = shalt.err (!%p396_p13)
}
  0x22   :  { %s400_s19 = scalar_lea.vmem %s40_s28, 128  ;;  %p405_p1 = scmp.lt.s32.totalorder %s40_s28, %s40_s28 }
  0x23   :  { %p401_p0 = scmp.ne.s32.totalorder %s40_s28, %s400_s19  ;;  %p406_p2 = scmp.lt.s32.totalorder %s400_s19, %s400_s19 }
  0x25   :  { %p407_p3 = por %p406_p2, %p405_p1 }
  0x27   :  { %p408_p4 = pnand %p407_p3, %p401_p0 }
  0x29   :  { %411 = shalt.err (!%p408_p4)
}
  0x2a   :  { %42 = dma.hbm_to_vmem [thread:$0]  %s616_s2, 128, %s40_s28, [#allocation8]  }
  0x2b   :  { %456 = dma.done.wait [#allocation5], 16  }
  0x2c   :  { %457 = vsyncadd [#allocation5], 4294967280 }
  0x2d   :  { %458 = dma.done.wait [#allocation3], 128  }
  0x2e   :  { %459 = vsyncadd [#allocation3], 4294967168 }
  0x2f   :  { %460 = dma.done.wait [#allocation8], 128  }
  0x30   :  { %461 = vsyncadd [#allocation8], 4294967168 }
  0x31   :  { %52 = sfence }
  0x32   :  { %s315_s21 = sld [smem:[#allocation2 + $0x2]]  ;;  %s317_s22 = sld [smem:[#allocation2 + $0x4]]  ;;  %v59_v0 = vld [vmem:[#allocation7] sm:$0xff]  ;;  %v58_v2 = vld [vmem:[#allocation6] sm:$0xff] }
  0x33   :  { %v60_v1 = vmax.f32 %v59_v0, 1e-06  ;;  %s316_s23 = sld [smem:[#allocation2 + $0x3]]  ;;  %s318_s2 = sld [smem:[#allocation2 + $0x5]] }
  0x34   :  { %s314_s24 = sld [smem:[#allocation2 + $0x1]]  ;;  %s469_s25 = smov [#allocation9]  }
  0x35   :  { %326 = vrsqrt.f32 %v60_v1  ;;  %vm63_vm0 = vcmp.eq.f32.partialorder %v60_v1, inf  ;;  %v66_v10 = vand.u32 2147483648, %v60_v1  ;;  %vm65_vm1 = vcmp.eq.f32.partialorder %v60_v1, 0.0  ;;  %s284_s26 = sshll.u32 %s469_s25, 4  ;;  %s285_s26 = int_to_ptr.vmem [resolvable:$true] %s284_s26 }
  0x36   :  { %s412_s27 = scalar_lea.vmem %s285_s26, 1024  ;;  %p417_p6 = scmp.lt.s32.totalorder %s285_s26, %s285_s26 }
  0x37   :  { %p413_p5 = scmp.ne.s32.totalorder %s285_s26, %s412_s27  ;;  %p418_p7 = scmp.lt.s32.totalorder %s412_s27, %s412_s27 }
  0x38   :  { %v534_v3 = vstv %s315_s21  ;;  %v536_v4 = vstv %s317_s22 }
  0x39   :  { %v70_v5 = vmul.f32 %v534_v3, %v58_v2  ;;  %v540_v7 = vstv %s316_s23  ;;  %v545_v14 = vstv %s318_s2  ;;  %p419_p8 = por %p418_p7, %p417_p6 }
  0x3a   :  { %v74_v13 = vmul.f32 %v540_v7, %v60_v1  ;;  %v548_v18 = vstv %s314_s24 }
  0x3b   :  { %v72_v6 = vadd.f32 %v536_v4, %v70_v5  ;;  %p420_p9 = pnand %p419_p8, %p413_p5 }
  0x3c   :  { %v76_v21 = vadd.f32 %v545_v14, %v74_v13 }
  0x3d   :  { %81 = vst [vmem:[#allocation9] sm:$0xff] %v72_v6  ;;  %v99_v8 = vmul.f32 %v72_v6, %v534_v3 }
  0x3f   :  { %v327_v9 = vpop.eup %326  ;;  %v100_v11 = vadd.f32 %v99_v8, %v536_v4 }
  0x40   :  { %v62_v12 = vmul.f32 %v327_v9, %v60_v1 }
  0x41   :  { %107 = vst [vmem:[#allocation9 + $0x8] sm:$0xff] %v100_v11  ;;  %v126_v15 = vmul.f32 %v100_v11, %v534_v3 }
  0x42   :  { %v64_v16 = vsel %vm63_vm0, %v60_v1, %v62_v12 }
  0x43   :  { %v67_v17 = vsel %vm65_vm1, %v66_v10, %v64_v16  ;;  %v127_v19 = vadd.f32 %v126_v15, %v536_v4 }
  0x44   :  { %v68_v20 = vsub.f32 0.0, %v67_v17 }
  0x45   :  { %134 = vst [vmem:[#allocation9 + $0x10] sm:$0xff] %v127_v19  ;;  %v153_v22 = vmul.f32 %v127_v19, %v534_v3 }
  0x46   :  { %v78_v23 = vmul.f32 %v548_v18, %v68_v20 }
  0x47   :  { %v154_v24 = vadd.f32 %v153_v22, %v536_v4 }
  0x48   :  { %v79_v25 = vadd.f32 %v78_v23, %v76_v21 }
  0x49   :  { %161 = vst [vmem:[#allocation9 + $0x18] sm:$0xff] %v154_v24  ;;  %v180_v26 = vmul.f32 %v154_v24, %v534_v3 }
  0x4a   :  { %v80_v27 = vmax.f32 %v79_v25, 1e-06 }
  0x4b   :  { %v181_v28 = vadd.f32 %v180_v26, %v536_v4 }
  0x4c   :  { %328 = vrsqrt.f32 %v80_v27  ;;  %v90_v29 = vmax.f32 %v80_v27, 1e-06  ;;  %vm84_vm2 = vcmp.eq.f32.partialorder %v80_v27, inf  ;;  %v87_v33 = vand.u32 2147483648, %v80_v27 }
  0x4d   :  { %188 = vst [vmem:[#allocation9 + $0x20] sm:$0xff] %v181_v28  ;;  %v207_v30 = vmul.f32 %v181_v28, %v534_v3  ;;  %vm86_vm3 = vcmp.eq.f32.partialorder %v80_v27, 0.0 }
  0x4e   :  { %330 = vrsqrt.f32 %v90_v29  ;;  %vm93_vm4 = vcmp.eq.f32.partialorder %v90_v29, inf  ;;  %v96_v37 = vand.u32 2147483648, %v90_v29  ;;  %vm95_vm5 = vcmp.eq.f32.partialorder %v90_v29, 0.0 }
  0x4f   :  { %v208_v31 = vadd.f32 %v207_v30, %v536_v4  ;;  %v101_v40 = vmul.f32 %v90_v29, %v540_v7 }
  0x51   :  { %215 = vst [vmem:[#allocation9 + $0x28] sm:$0xff] %v208_v31  ;;  %v234_v43 = vmul.f32 %v208_v31, %v534_v3  ;;  %v102_v45 = vadd.f32 %v101_v40, %v545_v14 }
  0x53   :  { %v235_v46 = vadd.f32 %v234_v43, %v536_v4 }
  0x55   :  { %242 = vst [vmem:[#allocation9 + $0x30] sm:$0xff] %v235_v46  ;;  %v261_v62 = vmul.f32 %v235_v46, %v534_v3 }
  0x56   :  { %v329_v32 = vpop.eup %328 }
  0x57   :  { %v83_v34 = vmul.f32 %v329_v32, %v80_v27  ;;  %v262_v1 = vadd.f32 %v261_v62, %v536_v4 }
  0x58   :  { %v331_v35 = vpop.eup %330 }
  0x59   :  { %v85_v36 = vsel %vm84_vm2, %v80_v27, %v83_v34  ;;  %v92_v39 = vmul.f32 %v331_v35, %v90_v29  ;;  %269 = vst [vmem:[#allocation9 + $0x38] sm:$0xff] %v262_v1 }
  0x5a   :  { %v88_v38 = vsel %vm86_vm3, %v87_v33, %v85_v36 }
  0x5b   :  { %89 = vst [vmem:[#allocation10] sm:$0xff] %v88_v38  ;;  %v94_v41 = vsel %vm93_vm4, %v90_v29, %v92_v39 }
  0x5c   :  { %v97_v42 = vsel %vm95_vm5, %v96_v37, %v94_v41 }
  0x5d   :  { %v98_v44 = vsub.f32 0.0, %v97_v42 }
  0x5f   :  { %v103_v47 = vmul.f32 %v98_v44, %v548_v18 }
  0x61   :  { %v104_v48 = vadd.f32 %v103_v47, %v102_v45 }
  0x63   :  { %v105_v49 = vmax.f32 %v104_v48, 1e-06 }
  0x65   :  { %332 = vrsqrt.f32 %v105_v49  ;;  %v117_v50 = vmax.f32 %v105_v49, 1e-06  ;;  %vm110_vm6 = vcmp.eq.f32.partialorder %v105_v49, inf  ;;  %v113_v52 = vand.u32 2147483648, %v105_v49 }
  0x66   :  { %vm112_vm7 = vcmp.eq.f32.partialorder %v105_v49, 0.0 }
  0x67   :  { %334 = vrsqrt.f32 %v117_v50  ;;  %vm120_vm8 = vcmp.eq.f32.partialorder %v117_v50, inf  ;;  %v123_v56 = vand.u32 2147483648, %v117_v50  ;;  %vm122_vm9 = vcmp.eq.f32.partialorder %v117_v50, 0.0 }
  0x68   :  { %v128_v59 = vmul.f32 %v117_v50, %v540_v7 }
  0x6a   :  { %v129_v0 = vadd.f32 %v128_v59, %v545_v14 }
  0x6f   :  { %v333_v51 = vpop.eup %332 }
  0x70   :  { %v109_v53 = vmul.f32 %v333_v51, %v105_v49 }
  0x71   :  { %v335_v54 = vpop.eup %334 }
  0x72   :  { %v111_v55 = vsel %vm110_vm6, %v105_v49, %v109_v53  ;;  %v119_v58 = vmul.f32 %v335_v54, %v117_v50 }
  0x73   :  { %v114_v57 = vsel %vm112_vm7, %v113_v52, %v111_v55 }
  0x74   :  { %116 = vst [vmem:[#allocation10 + $0x8] sm:$0xff] %v114_v57  ;;  %v121_v60 = vsel %vm120_vm8, %v117_v50, %v119_v58 }
  0x75   :  { %v124_v61 = vsel %vm122_vm9, %v123_v56, %v121_v60 }
  0x76   :  { %v125_v63 = vsub.f32 0.0, %v124_v61 }
  0x78   :  { %v130_v2 = vmul.f32 %v125_v63, %v548_v18 }
  0x7a   :  { %v131_v5 = vadd.f32 %v130_v2, %v129_v0 }
  0x7c   :  { %v132_v6 = vmax.f32 %v131_v5, 1e-06 }
  0x7e   :  { %336 = vrsqrt.f32 %v132_v6  ;;  %v144_v8 = vmax.f32 %v132_v6, 1e-06  ;;  %vm137_vm10 = vcmp.eq.f32.partialorder %v132_v6, inf  ;;  %v140_v10 = vand.u32 2147483648, %v132_v6 }
  0x7f   :  { %vm139_vm11 = vcmp.eq.f32.partialorder %v132_v6, 0.0 }
  0x80   :  { %338 = vrsqrt.f32 %v144_v8  ;;  %vm147_vm12 = vcmp.eq.f32.partialorder %v144_v8, inf  ;;  %v150_v13 = vand.u32 2147483648, %v144_v8  ;;  %vm149_vm13 = vcmp.eq.f32.partialorder %v144_v8, 0.0 }
  0x81   :  { %v155_v4 = vmul.f32 %v144_v8, %v540_v7 }
  0x83   :  { %v156_v21 = vadd.f32 %v155_v4, %v545_v14 }
  0x88   :  { %v337_v9 = vpop.eup %336 }
  0x89   :  { %v136_v11 = vmul.f32 %v337_v9, %v132_v6 }
  0x8a   :  { %v339_v12 = vpop.eup %338 }
  0x8b   :  { %v138_v3 = vsel %vm137_vm10, %v132_v6, %v136_v11  ;;  %v146_v16 = vmul.f32 %v339_v12, %v144_v8 }
  0x8c   :  { %v141_v15 = vsel %vm139_vm11, %v140_v10, %v138_v3 }
  0x8d   :  { %143 = vst [vmem:[#allocation10 + $0x10] sm:$0xff] %v141_v15  ;;  %v148_v17 = vsel %vm147_vm12, %v144_v8, %v146_v16 }
  0x8e   :  { %v151_v19 = vsel %vm149_vm13, %v150_v13, %v148_v17 }
  0x8f   :  { %v152_v20 = vsub.f32 0.0, %v151_v19 }
  0x90   :  { %423 = shalt.err (!%p420_p9)
}
  0x91   :  { %s424_s30 = scalar_lea.hbm %s617_s3, 1024 }
  0x92   :  { %p425_p10 = scmp.ne.s32.totalorder %s617_s3, %s424_s30  ;;  %p428_p11 = scmp.lt.u32.totalorder %s424_s30, %s617_s3 }
  0x94   :  { %p430_p12 = pnand %p428_p11, %p425_p10 }
  0x96   :  { %433 = shalt.err (!%p430_p12)
}
  0x97   :  { %s470_s9 = smov 128   ;;  %s471_s0 = smov 8   ;;  %v157_v22 = vmul.f32 %v152_v20, %v548_v18 }
  0x98   :  { %290 = dma.vmem_to_hbm [thread:$0]  %s285_s26, 1024, %s617_s3, [#allocation4], %s470_s9, %s470_s9, %s471_s0  }
  0x99   :  { %v158_v23 = vadd.f32 %v157_v22, %v156_v21  ;;  %s472_s3 = smov [#allocation10]  }
  0x9a   :  { %s296_s12 = sshll.u32 %s472_s3, 4  ;;  %s297_s12 = int_to_ptr.vmem [resolvable:$true] %s296_s12 }
  0x9b   :  { %v159_v24 = vmax.f32 %v158_v23, 1e-06  ;;  %s434_s13 = scalar_lea.vmem %s297_s12, 1024  ;;  %p439_p0 = scmp.lt.s32.totalorder %s297_s12, %s297_s12 }
  0x9c   :  { %p435_p13 = scmp.ne.s32.totalorder %s297_s12, %s434_s13  ;;  %p440_p1 = scmp.lt.s32.totalorder %s434_s13, %s434_s13 }
  0x9d   :  { %340 = vrsqrt.f32 %v159_v24  ;;  %v171_v25 = vmax.f32 %v159_v24, 1e-06  ;;  %vm164_vm14 = vcmp.eq.f32.partialorder %v159_v24, inf  ;;  %v167_v27 = vand.u32 2147483648, %v159_v24 }
  0x9e   :  { %vm166_vm15 = vcmp.eq.f32.partialorder %v159_v24, 0.0  ;;  %p441_p2 = por %p440_p1, %p439_p0 }
  0x9f   :  { %342 = vrsqrt.f32 %v171_v25  ;;  %vm174_vm0 = vcmp.eq.f32.partialorder %v171_v25, inf  ;;  %v177_v31 = vand.u32 2147483648, %v171_v25  ;;  %vm176_vm1 = vcmp.eq.f32.partialorder %v171_v25, 0.0 }
  0xa0   :  { %v182_v34 = vmul.f32 %v171_v25, %v540_v7  ;;  %p442_p3 = pnand %p441_p2, %p435_p13 }
  0xa2   :  { %v183_v38 = vadd.f32 %v182_v34, %v545_v14 }
  0xa7   :  { %v341_v26 = vpop.eup %340 }
  0xa8   :  { %v163_v28 = vmul.f32 %v341_v26, %v159_v24 }
  0xa9   :  { %v343_v29 = vpop.eup %342 }
  0xaa   :  { %v165_v30 = vsel %vm164_vm14, %v159_v24, %v163_v28  ;;  %v173_v33 = vmul.f32 %v343_v29, %v171_v25 }
  0xab   :  { %v168_v32 = vsel %vm166_vm15, %v167_v27, %v165_v30 }
  0xac   :  { %170 = vst [vmem:[#allocation10 + $0x18] sm:$0xff] %v168_v32  ;;  %v175_v35 = vsel %vm174_vm0, %v171_v25, %v173_v33 }
  0xad   :  { %v178_v36 = vsel %vm176_vm1, %v177_v31, %v175_v35 }
  0xae   :  { %v179_v37 = vsub.f32 0.0, %v178_v36 }
  0xb0   :  { %v184_v39 = vmul.f32 %v179_v37, %v548_v18 }
  0xb2   :  { %v185_v40 = vadd.f32 %v184_v39, %v183_v38 }
  0xb4   :  { %v186_v41 = vmax.f32 %v185_v40, 1e-06 }
  0xb6   :  { %344 = vrsqrt.f32 %v186_v41  ;;  %v198_v42 = vmax.f32 %v186_v41, 1e-06  ;;  %vm191_vm2 = vcmp.eq.f32.partialorder %v186_v41, inf  ;;  %v194_v44 = vand.u32 2147483648, %v186_v41 }
  0xb7   :  { %vm193_vm3 = vcmp.eq.f32.partialorder %v186_v41, 0.0 }
  0xb8   :  { %346 = vrsqrt.f32 %v198_v42  ;;  %vm201_vm4 = vcmp.eq.f32.partialorder %v198_v42, inf  ;;  %v204_v48 = vand.u32 2147483648, %v198_v42  ;;  %vm203_vm5 = vcmp.eq.f32.partialorder %v198_v42, 0.0 }
  0xb9   :  { %v209_v51 = vmul.f32 %v198_v42, %v540_v7 }
  0xbb   :  { %v210_v55 = vadd.f32 %v209_v51, %v545_v14 }
  0xc0   :  { %v345_v43 = vpop.eup %344 }
  0xc1   :  { %v190_v45 = vmul.f32 %v345_v43, %v186_v41 }
  0xc2   :  { %v347_v46 = vpop.eup %346 }
  0xc3   :  { %v192_v47 = vsel %vm191_vm2, %v186_v41, %v190_v45  ;;  %v200_v50 = vmul.f32 %v347_v46, %v198_v42 }
  0xc4   :  { %v195_v49 = vsel %vm193_vm3, %v194_v44, %v192_v47 }
  0xc5   :  { %197 = vst [vmem:[#allocation10 + $0x20] sm:$0xff] %v195_v49  ;;  %v202_v52 = vsel %vm201_vm4, %v198_v42, %v200_v50 }
  0xc6   :  { %v205_v53 = vsel %vm203_vm5, %v204_v48, %v202_v52 }
  0xc7   :  { %v206_v54 = vsub.f32 0.0, %v205_v53 }
  0xc9   :  { %v211_v56 = vmul.f32 %v206_v54, %v548_v18 }
  0xcb   :  { %v212_v57 = vadd.f32 %v211_v56, %v210_v55 }
  0xcd   :  { %v213_v58 = vmax.f32 %v212_v57, 1e-06 }
  0xcf   :  { %348 = vrsqrt.f32 %v213_v58  ;;  %v225_v59 = vmax.f32 %v213_v58, 1e-06  ;;  %vm218_vm6 = vcmp.eq.f32.partialorder %v213_v58, inf  ;;  %v221_v61 = vand.u32 2147483648, %v213_v58 }
  0xd0   :  { %vm220_vm7 = vcmp.eq.f32.partialorder %v213_v58, 0.0 }
  0xd1   :  { %350 = vrsqrt.f32 %v225_v59  ;;  %vm228_vm8 = vcmp.eq.f32.partialorder %v225_v59, inf  ;;  %v231_v1 = vand.u32 2147483648, %v225_v59  ;;  %vm230_vm9 = vcmp.eq.f32.partialorder %v225_v59, 0.0 }
  0xd2   :  { %v236_v6 = vmul.f32 %v225_v59, %v540_v7 }
  0xd4   :  { %v237_v11 = vadd.f32 %v236_v6, %v545_v14 }
  0xd9   :  { %v349_v60 = vpop.eup %348 }
  0xda   :  { %v217_v62 = vmul.f32 %v349_v60, %v213_v58 }
  0xdb   :  { %v351_v63 = vpop.eup %350 }
  0xdc   :  { %v219_v0 = vsel %vm218_vm6, %v213_v58, %v217_v62  ;;  %v227_v5 = vmul.f32 %v351_v63, %v225_v59 }
  0xdd   :  { %v222_v2 = vsel %vm220_vm7, %v221_v61, %v219_v0 }
  0xde   :  { %224 = vst [vmem:[#allocation10 + $0x28] sm:$0xff] %v222_v2  ;;  %v229_v8 = vsel %vm228_vm8, %v225_v59, %v227_v5 }
  0xdf   :  { %v232_v9 = vsel %vm230_vm9, %v231_v1, %v229_v8 }
  0xe0   :  { %v233_v10 = vsub.f32 0.0, %v232_v9 }
  0xe2   :  { %v238_v12 = vmul.f32 %v233_v10, %v548_v18 }
  0xe4   :  { %v239_v3 = vadd.f32 %v238_v12, %v237_v11 }
  0xe6   :  { %v240_v13 = vmax.f32 %v239_v3, 1e-06 }
  0xe8   :  { %352 = vrsqrt.f32 %v240_v13  ;;  %v252_v15 = vmax.f32 %v240_v13, 1e-06  ;;  %vm245_vm10 = vcmp.eq.f32.partialorder %v240_v13, inf  ;;  %v248_v4 = vand.u32 2147483648, %v240_v13 }
  0xe9   :  { %vm247_vm11 = vcmp.eq.f32.partialorder %v240_v13, 0.0 }
  0xea   :  { %354 = vrsqrt.f32 %v252_v15  ;;  %vm255_vm12 = vcmp.eq.f32.partialorder %v252_v15, inf  ;;  %v258_v21 = vand.u32 2147483648, %v252_v15  ;;  %vm257_vm13 = vcmp.eq.f32.partialorder %v252_v15, 0.0 }
  0xeb   :  { %v263_v24 = vmul.f32 %v252_v15, %v540_v7 }
  0xed   :  { %v264_v28 = vadd.f32 %v263_v24, %v545_v14 }
  0xf2   :  { %v353_v16 = vpop.eup %352 }
  0xf3   :  { %v244_v17 = vmul.f32 %v353_v16, %v240_v13 }
  0xf4   :  { %v355_v19 = vpop.eup %354 }
  0xf5   :  { %v246_v20 = vsel %vm245_vm10, %v240_v13, %v244_v17  ;;  %v254_v23 = vmul.f32 %v355_v19, %v252_v15 }
  0xf6   :  { %v249_v22 = vsel %vm247_vm11, %v248_v4, %v246_v20 }
  0xf7   :  { %251 = vst [vmem:[#allocation10 + $0x30] sm:$0xff] %v249_v22  ;;  %v256_v25 = vsel %vm255_vm12, %v252_v15, %v254_v23 }
  0xf8   :  { %v259_v26 = vsel %vm257_vm13, %v258_v21, %v256_v25 }
  0xf9   :  { %v260_v27 = vsub.f32 0.0, %v259_v26 }
  0xfb   :  { %v265_v29 = vmul.f32 %v260_v27, %v548_v18 }
  0xfd   :  { %v266_v30 = vadd.f32 %v265_v29, %v264_v28 }
  0xff   :  { %v267_v31 = vmax.f32 %v266_v30, 1e-06 }
 0x101   :  { %356 = vrsqrt.f32 %v267_v31  ;;  %vm272_vm14 = vcmp.eq.f32.partialorder %v267_v31, inf  ;;  %v275_v33 = vand.u32 2147483648, %v267_v31  ;;  %vm274_vm15 = vcmp.eq.f32.partialorder %v267_v31, 0.0 }
 0x10b   :  { %v357_v32 = vpop.eup %356 }
 0x10c   :  { %v271_v34 = vmul.f32 %v357_v32, %v267_v31 }
 0x10e   :  { %v273_v35 = vsel %vm272_vm14, %v267_v31, %v271_v34 }
 0x10f   :  { %v276_v7 = vsel %vm274_vm15, %v275_v33, %v273_v35 }
 0x110   :  { %278 = vst [vmem:[#allocation10 + $0x38] sm:$0xff] %v276_v7 }
 0x111   :  { %445 = shalt.err (!%p442_p3)
}
 0x112   :  { %s446_s16 = scalar_lea.hbm %s618_s4, 1024 }
 0x113   :  { %p447_p4 = scmp.ne.s32.totalorder %s618_s4, %s446_s16  ;;  %p450_p5 = scmp.lt.u32.totalorder %s446_s16, %s618_s4 }
 0x115   :  { %p452_p6 = pnand %p450_p5, %p447_p4 }
 0x117   :  { %455 = shalt.err (!%p452_p6)
}
 0x118   :  { %302 = dma.vmem_to_hbm [thread:$0]  %s297_s12, 1024, %s618_s4, [#allocation11], %s470_s9, %s470_s9, %s471_s0  }
 0x119   :  { %462 = dma.done.wait [#allocation4], 1024  }
 0x11a   :  { %463 = vsyncadd [#allocation4], 4294966272 }
 0x11b   :  { %464 = dma.done.wait [#allocation11], 1024  }
 0x11c   :  { %465 = vsyncadd [#allocation11], 4294966272 }
 0x11d   :  { %309 = vsyncpa [#allocation3], 1 }
 0x11e   :  { %310 = vsyncpa [#allocation8], 1 }
 0x11f   :  { %311 = vsyncpa [#allocation4], 1 }
 0x120   :  { %312 = vsyncpa [#allocation11], 1 }
 0x121   :  { %313 = vsyncpa [#allocation5], 1 }

</bundles_post_ra>
